<compile_context>
chip_gen: v6e
topology: v6e:2x2x1
jax: 0.10.0
libtpu: 0.0.40
codegen_flags: <defaults>
</compile_context>

<pallas_src>
import jax
import jax.numpy as jnp
from jax.experimental import pallas as pl
from jax.experimental.pallas import tpu as pltpu


def mlp_encoder_kernel(x_ref, w1_ref, b1_ref, w2_ref, b2_ref, z_ref):
    # Cast x to bf16 in-kernel (kernel is MXU/DMA bound; the cast is free VPU work).
    x_bf = x_ref[...].astype(jnp.bfloat16)
    # Layer 1: bf16 MXU inputs, f32 accumulation.
    h = jnp.dot(x_bf, w1_ref[...], preferred_element_type=jnp.float32)
    # Bias-add + ReLU in bf16 (b1 is pre-cast); halves inter-matmul traffic.
    h = jnp.maximum(h.astype(jnp.bfloat16) + b1_ref[...], 0.0)
    # Layer 2: bf16 MXU inputs, f32 accumulation; bias-add + store in f32.
    z = jnp.dot(h, w2_ref[...], preferred_element_type=jnp.float32)
    z_ref[...] = (z + b2_ref[...]).astype(z_ref.dtype)


def _round_up(n, m):
    return ((n + m - 1) // m) * m


def prepare_encoder_params(params):
    """One-time parameter prep (do this OUTSIDE the per-step forward path):
    pad the output dim to a lane-dense multiple of 128 and cast the MXU
    operands (w1, b1, w2) to bf16."""
    w1, b1, w2, b2 = params
    d_in, h_dim = w1.shape
    out_dim = w2.shape[1]                       # 2 * z_dim
    out_p = _round_up(out_dim, 128)             # lane-dense output store
    w2_p = jnp.zeros((h_dim, out_p), jnp.float32).at[:, :out_dim].set(w2)
    b2_p = jnp.zeros((1, out_p), jnp.float32).at[:, :out_dim].set(
        jnp.asarray(b2, jnp.float32).reshape(1, -1))
    return {
        "w1": jnp.asarray(w1, jnp.float32).astype(jnp.bfloat16),          # (d_in, h_dim)
        "b1": jnp.asarray(b1, jnp.float32).reshape(1, -1).astype(jnp.bfloat16),
        "w2": w2_p.astype(jnp.bfloat16),                                  # (h_dim, out_p)
        "b2": b2_p,                                                       # (1, out_p) f32
        "d_in": d_in, "h_dim": h_dim, "out_dim": out_dim, "out_p": out_p,
    }


def _pick_batch_tile(B):
    # Small batches: one block (block dim == full dim is always legal).
    if B <= 256:
        return B
    # Otherwise: up to 512 rows per step, but at least 2 grid steps so the
    # "parallel" batch axis can shard across v7x's two TensorCores.
    return min(512, _round_up(-(-B // 2), 8))


def mlp_encoder_forward(x, prepped, z_dim):
    """x: [B, C, H, W] float32 in [0,1]. Returns (mean, log_std), each [B, z_dim]."""
    B = x.shape[0]
    x_flat = x.reshape(B, -1).astype(jnp.float32)   # same as torch .view(B, -1)
    d_in = prepped["d_in"]
    h_dim = prepped["h_dim"]
    out_dim = prepped["out_dim"]
    out_p = prepped["out_p"]
    assert x_flat.shape[1] == d_in

    TM = _pick_batch_tile(B)
    grid = (pl.cdiv(B, TM),)                        # ragged last block handled by Pallas

    cost = pl.CostEstimate(
        flops=2 * B * (d_in * h_dim + h_dim * out_p),
        transcendentals=0,
        bytes_accessed=(B * d_in * 4                # x (f32 in HBM, cast in-kernel)
                        + d_in * h_dim * 2          # w1 bf16
                        + h_dim * 2                 # b1 bf16
                        + h_dim * out_p * 2         # w2 bf16
                        + out_p * 4                 # b2 f32
                        + B * out_p * 4),           # z f32
    )

    z = pl.pallas_call(
        mlp_encoder_kernel,
        out_shape=jax.ShapeDtypeStruct((B, out_p), jnp.float32),
        grid=grid,
        in_specs=[
            pl.BlockSpec((TM, d_in), lambda i: (i, 0)),      # batch-tiled x (full K)
            pl.BlockSpec((d_in, h_dim), lambda i: (0, 0)),   # weight-resident
            pl.BlockSpec((1, h_dim), lambda i: (0, 0)),
            pl.BlockSpec((h_dim, out_p), lambda i: (0, 0)),  # weight-resident
            pl.BlockSpec((1, out_p), lambda i: (0, 0)),
        ],
        out_specs=pl.BlockSpec((TM, out_p), lambda i: (i, 0)),
        compiler_params=pltpu.CompilerParams(
            dimension_semantics=("parallel",),
        ),
        cost_estimate=cost,
    )(x_flat, prepped["w1"], prepped["b1"], prepped["w2"], prepped["b2"])

    z = z[:, :out_dim]                               # drop lane padding
    mean, log_std = z[:, :z_dim], z[:, z_dim:]       # torch.chunk(z, 2, dim=1)
    return mean, log_std


def init_params(key, input_dim, hidden_dim, z_dim):
    """Deterministic init matching nn.Linear default: U(-1/sqrt(fan_in), 1/sqrt(fan_in))."""
    k1, k2, k3, k4 = jax.random.split(key, 4)
    lim1 = 1.0 / jnp.sqrt(input_dim)
    lim2 = 1.0 / jnp.sqrt(hidden_dim)
    w1 = jax.random.uniform(k1, (input_dim, hidden_dim), jnp.float32, -lim1, lim1)
    b1 = jax.random.uniform(k2, (1, hidden_dim), jnp.float32, -lim1, lim1)
    w2 = jax.random.uniform(k3, (hidden_dim, 2 * z_dim), jnp.float32, -lim2, lim2)
    b2 = jax.random.uniform(k4, (1, 2 * z_dim), jnp.float32, -lim2, lim2)
    return (w1, b1, w2, b2)


if __name__ == "__main__":
    # Module defaults: input_dim=784 (MNIST 1x28x28), hidden_dims=[512], z_dim=20
    B, C, H, W = 2, 1, 28, 28
    input_dim = C * H * W
    hidden_dim = 512
    z_dim = 20

    key = jax.random.PRNGKey(0)
    k_x, k_p = jax.random.split(key)
    x = jax.random.uniform(k_x, (B, C, H, W), jnp.float32, 0.0, 1.0)
    params = init_params(k_p, input_dim, hidden_dim, z_dim)

    # One-time parameter prep (hoisted out of the forward path).
    prepped = prepare_encoder_params(params)
    jax.block_until_ready(prepped)

    mean, log_std = mlp_encoder_forward(x, prepped, z_dim)
    jax.block_until_ready((mean, log_std))

    # Pure-JAX f32 reference (tolerance relaxed for the bf16 MXU/VPU path).
    x_flat = x.reshape(B, -1)
    w1, b1, w2, b2 = params
    h_ref = jnp.maximum(x_flat @ w1 + b1, 0.0)
    z_ref = h_ref @ w2 + b2
    mean_ref, log_std_ref = z_ref[:, :z_dim], z_ref[:, z_dim:]
    assert mean.shape == (B, z_dim) and log_std.shape == (B, z_dim)
    assert jnp.allclose(mean, mean_ref, atol=2e-2, rtol=2e-2)
    assert jnp.allclose(log_std, log_std_ref, atol=2e-2, rtol=2e-2)

    print("KERNEL_OK")
</pallas_src>

<mosaic_0001>
module attributes {stable_mosaic.version = 11 : i64} {
  func.func @mlp_encoder_kernel(%arg0: i32, %arg1: memref<2x784xf32, #tpu.memory_space<vmem>>, %arg2: memref<784x512xbf16, #tpu.memory_space<vmem>>, %arg3: memref<1x512xbf16, #tpu.memory_space<vmem>>, %arg4: memref<512x128xbf16, #tpu.memory_space<vmem>>, %arg5: memref<1x128xf32, #tpu.memory_space<vmem>>, %arg6: memref<2x128xf32, #tpu.memory_space<vmem>>) attributes {dimension_semantics = [#tpu.dimension_semantics<parallel>], iteration_bounds = array<i64: 1>, scalar_prefetch = 0 : i64, scratch_operands = 0 : i64, tpu.core_type = #tpu.core_type<tc>, window_params = [{transform_indices = @transform_0, window_bounds = array<i64: 2, 784>}, {pipeline_mode = #tpu.pipeline_mode<synchronous>, transform_indices = @transform_1, window_bounds = array<i64: 784, 512>}, {pipeline_mode = #tpu.pipeline_mode<synchronous>, transform_indices = @transform_2, window_bounds = array<i64: 1, 512>}, {pipeline_mode = #tpu.pipeline_mode<synchronous>, transform_indices = @transform_3, window_bounds = array<i64: 512, 128>}, {pipeline_mode = #tpu.pipeline_mode<synchronous>, transform_indices = @transform_4, window_bounds = array<i64: 1, 128>}, {transform_indices = @transform_5, window_bounds = array<i64: 2, 128>}]} {
    %c0 = arith.constant 0 : index
    %c0_0 = arith.constant 0 : index
    %0 = vector.load %arg1[%c0, %c0_0] : memref<2x784xf32, #tpu.memory_space<vmem>>, vector<2x784xf32>
    %1 = arith.truncf %0 : vector<2x784xf32> to vector<2x784xbf16>
    %c0_1 = arith.constant 0 : index
    %c0_2 = arith.constant 0 : index
    %2 = vector.load %arg2[%c0_1, %c0_2] : memref<784x512xbf16, #tpu.memory_space<vmem>>, vector<784x512xbf16>
    %cst = arith.constant dense<0.000000e+00> : vector<2x512xf32>
    %3 = tpu.matmul %1, %2, %cst {dimension_numbers = #tpu.dot_dimension_numbers<[1], [0], [0], [1], [0, 0, 1, 1], [], []>} : vector<2x784xbf16>, vector<784x512xbf16>, vector<2x512xf32> -> vector<2x512xf32>
    %4 = arith.truncf %3 : vector<2x512xf32> to vector<2x512xbf16>
    %c0_3 = arith.constant 0 : index
    %c0_4 = arith.constant 0 : index
    %5 = vector.load %arg3[%c0_3, %c0_4] : memref<1x512xbf16, #tpu.memory_space<vmem>>, vector<1x512xbf16>
    %6 = vector.broadcast %5 : vector<1x512xbf16> to vector<2x512xbf16>
    %7 = arith.addf %4, %6 : vector<2x512xbf16>
    %cst_5 = arith.constant 0.000000e+00 : bf16
    %8 = vector.broadcast %cst_5 : bf16 to vector<2x512xbf16>
    %9 = arith.maximumf %7, %8 : vector<2x512xbf16>
    %c0_6 = arith.constant 0 : index
    %c0_7 = arith.constant 0 : index
    %10 = vector.load %arg4[%c0_6, %c0_7] : memref<512x128xbf16, #tpu.memory_space<vmem>>, vector<512x128xbf16>
    %cst_8 = arith.constant dense<0.000000e+00> : vector<2x128xf32>
    %11 = tpu.matmul %9, %10, %cst_8 {dimension_numbers = #tpu.dot_dimension_numbers<[1], [0], [0], [1], [0, 0, 1, 1], [], []>} : vector<2x512xbf16>, vector<512x128xbf16>, vector<2x128xf32> -> vector<2x128xf32>
    %c0_9 = arith.constant 0 : index
    %c0_10 = arith.constant 0 : index
    %12 = vector.load %arg5[%c0_9, %c0_10] : memref<1x128xf32, #tpu.memory_space<vmem>>, vector<1x128xf32>
    %13 = vector.broadcast %12 : vector<1x128xf32> to vector<2x128xf32>
    %14 = arith.addf %11, %13 : vector<2x128xf32>
    %c0_11 = arith.constant 0 : index
    %c0_12 = arith.constant 0 : index
    %15 = vector.load %arg6[%c0_11, %c0_12] : memref<2x128xf32, #tpu.memory_space<vmem>>, vector<2x128xf32>
    tpu.vector_store %arg6[%c0_11, %c0_12], %14 {strides = array<i32>} : memref<2x128xf32, #tpu.memory_space<vmem>>, vector<2x128xf32>,
    return
  }
  func.func @transform_0(%arg0: i32) -> (i32, i32) {
    %c0_i32 = arith.constant 0 : i32
    %c0_i32_0 = arith.constant 0 : i32
    return %arg0, %c0_i32 : i32, i32
  }
  func.func @transform_1(%arg0: i32) -> (i32, i32) {
    %c0_i32 = arith.constant 0 : i32
    %c0_i32_0 = arith.constant 0 : i32
    %c0_i32_1 = arith.constant 0 : i32
    return %c0_i32, %c0_i32_0 : i32, i32
  }
  func.func @transform_2(%arg0: i32) -> (i32, i32) {
    %c0_i32 = arith.constant 0 : i32
    %c0_i32_0 = arith.constant 0 : i32
    %c0_i32_1 = arith.constant 0 : i32
    return %c0_i32, %c0_i32_0 : i32, i32
  }
  func.func @transform_3(%arg0: i32) -> (i32, i32) {
    %c0_i32 = arith.constant 0 : i32
    %c0_i32_0 = arith.constant 0 : i32
    %c0_i32_1 = arith.constant 0 : i32
    return %c0_i32, %c0_i32_0 : i32, i32
  }
  func.func @transform_4(%arg0: i32) -> (i32, i32) {
    %c0_i32 = arith.constant 0 : i32
    %c0_i32_0 = arith.constant 0 : i32
    %c0_i32_1 = arith.constant 0 : i32
    return %c0_i32, %c0_i32_0 : i32, i32
  }
  func.func @transform_5(%arg0: i32) -> (i32, i32) {
    %c0_i32 = arith.constant 0 : i32
    %c0_i32_0 = arith.constant 0 : i32
    return %arg0, %c0_i32 : i32, i32
  }
}

</mosaic_0001>

<bundles_post_ra>
// kernel: tpu_custom_call.1
= control target key start
LH: loop header
LB: loop body
LE: loop exit
PB: predicated region body
PF: predicated region fallthrough
CT: control target
= control target key end

     0   :  { %10 = vsyncpa [#allocation3], 0  ;;  %s2896_s0 = inlined_call_operand.hbm [shape: f32[2,784], index: 0, kind: input, shape index: {}]   ;;  %s2897_s1 = inlined_call_operand.hbm [shape: bf16[784,512], index: 1, kind: input, shape index: {}]   ;;  %s2898_s2 = inlined_call_operand.hbm [shape: bf16[1,512], index: 2, kind: input, shape index: {}]   ;;  %s2899_s3 = inlined_call_operand.hbm [shape: bf16[512,128], index: 3, kind: input, shape index: {}]   ;;  %s2900_s4 = inlined_call_operand.vmem [shape: f32[1,128], index: 4, kind: input, shape index: {}]   ;;  %s2901_s5 = inlined_call_operand.hbm [shape: f32[2,128], index: 5, kind: output, shape index: {}]  }
   0x1   :  { %11 = vsyncpa [#allocation6], 0 }
   0x2   :  { %12 = vsyncpa [#allocation9], 0 }
   0x3   :  { %13 = vsyncpa [#allocation4], 0  ;;  %s2783_s18 = smov [#allocation5]  }
   0x4   :  { %s29_s19 = sshll.u32 %s2783_s18, 4  ;;  %s30_s19 = int_to_ptr.vmem [resolvable:$true] %s29_s19 }
   0x5   :  { %s2683_s20 = scalar_lea.vmem %s30_s19, 25088  ;;  %p2688_p1 = scmp.lt.s32.totalorder %s30_s19, %s30_s19 }
   0x6   :  { %p2684_p0 = scmp.ne.s32.totalorder %s30_s19, %s2683_s20  ;;  %p2689_p2 = scmp.lt.s32.totalorder %s2683_s20, %s2683_s20 }
   0x8   :  { %p2690_p3 = por %p2689_p2, %p2688_p1 }
   0xa   :  { %p2691_p4 = pnand %p2690_p3, %p2684_p0 }
   0xc   :  { %2694 = shalt.err (!%p2691_p4)
}
   0xd   :  { %s2784_s21 = smov 256   ;;  %s2785_s22 = smov 16  }
   0xe   :  { %35 = dma.hbm_to_vmem [thread:$0]  %s2897_s1, 25088, %s30_s19, [#allocation6], %s2784_s21, %s2784_s21, %s2785_s22  }
   0xf   :  { %s2786_s25 = smov [#allocation2]   ;;  %s2787_s27 = smov [#allocation7]  }
  0x10   :  { %s20_s26 = sshll.u32 %s2786_s25, 4  ;;  %s42_s28 = sshll.u32 %s2787_s27, 4  ;;  %s21_s26 = int_to_ptr.vmem [resolvable:$true] %s20_s26  ;;  %s43_s28 = int_to_ptr.vmem [resolvable:$true] %s42_s28 }
  0x11   :  { %s2703_s29 = scalar_lea.vmem %s21_s26, 224  ;;  %p2708_p6 = scmp.lt.s32.totalorder %s21_s26, %s21_s26 }
  0x12   :  { %p2704_p5 = scmp.ne.s32.totalorder %s21_s26, %s2703_s29  ;;  %p2709_p7 = scmp.lt.s32.totalorder %s2703_s29, %s2703_s29 }
  0x14   :  { %p2710_p8 = por %p2709_p7, %p2708_p6 }
  0x16   :  { %p2711_p9 = pnand %p2710_p8, %p2704_p5 }
  0x18   :  { %2714 = shalt.err (!%p2711_p9)
}
  0x19   :  { %23 = dma.hbm_to_vmem [thread:$0]  %s2896_s0, 224, %s21_s26, [#allocation3]  }
  0x1a   :  { %s2723_s7 = scalar_lea.vmem %s43_s28, 64  ;;  %p2728_p11 = scmp.lt.s32.totalorder %s43_s28, %s43_s28 }
  0x1b   :  { %p2724_p10 = scmp.ne.s32.totalorder %s43_s28, %s2723_s7  ;;  %p2729_p12 = scmp.lt.s32.totalorder %s2723_s7, %s2723_s7 }
  0x1d   :  { %p2730_p13 = por %p2729_p12, %p2728_p11 }
  0x1f   :  { %p2731_p0 = pnand %p2730_p13, %p2724_p10 }
  0x21   :  { %2734 = shalt.err (!%p2731_p0)
}
  0x22   :  { %45 = dma.hbm_to_vmem [thread:$0]  %s2898_s2, 64, %s43_s28, [#allocation6]  }
  0x23   :  { %s2788_s9 = smov [#allocation8]  }
  0x24   :  { %s51_s10 = sshll.u32 %s2788_s9, 4  ;;  %s52_s10 = int_to_ptr.vmem [resolvable:$true] %s51_s10 }
  0x25   :  { %s2743_s11 = scalar_lea.vmem %s52_s10, 4096  ;;  %p2748_p2 = scmp.lt.s32.totalorder %s52_s10, %s52_s10 }
  0x26   :  { %p2744_p1 = scmp.ne.s32.totalorder %s52_s10, %s2743_s11  ;;  %p2749_p3 = scmp.lt.s32.totalorder %s2743_s11, %s2743_s11 }
  0x28   :  { %p2750_p4 = por %p2749_p3, %p2748_p2 }
  0x2a   :  { %p2751_p5 = pnand %p2750_p4, %p2744_p1 }
  0x2c   :  { %2754 = shalt.err (!%p2751_p5)
}
  0x2d   :  { %s2789_s0 = smov 64   ;;  %s2790_s12 = smov 4  }
  0x2e   :  { %57 = dma.hbm_to_vmem [thread:$0]  %s2899_s3, 4096, %s52_s10, [#allocation9], %s2789_s0, %s2789_s0, %s2790_s12  }
  0x2f   :  { %2775 = dma.done.wait [#allocation3], 224  }
  0x30   :  { %2776 = vsyncadd [#allocation3], 4294967072 }
  0x31   :  { %2777 = dma.done.wait [#allocation6], 25152  }
  0x32   :  { %2778 = vsyncadd [#allocation6], 4294942144 }
  0x33   :  { %2779 = dma.done.wait [#allocation9], 4096  }
  0x34   :  { %2780 = vsyncadd [#allocation9], 4294963200  ;;  %v2347_v0 = vld [vmem:[#allocation5 + $0xe4] ss:$16 sps:$4 sm:$0xff]   ;;  %v2351_v2 = vld [vmem:[#allocation5 + $0xe0] ss:$16 sps:$4 sm:$0xff]   ;;  %v81_v38 = vlaneseq }
  0x35   :  { %v2349_v1 = vld [vmem:[#allocation5 + $0x2e4] ss:$16 sps:$4 sm:$0xff]   ;;  %1304 = vmatprep.subr.bf16.mxu0 %v2347_v0  ;;  %v2352_v3 = vld [vmem:[#allocation5 + $0x2e0] ss:$16 sps:$4 sm:$0xff]   ;;  %v2791_v36 = vmov 1983009808  }
  0x36   :  { %1345 = vmatprep.subr.bf16.mxu1 %v2349_v1  ;;  %v2353_v4 = vld [vmem:[#allocation5 + $0xc4] ss:$16 sps:$4 sm:$0xff]   ;;  %1305 = vmatpush1.bf16.msra.mxu0 %v2351_v2  ;;  %v2357_v6 = vld [vmem:[#allocation5 + $0xc0] ss:$16 sps:$4 sm:$0xff]   ;;  %v79_v37 = vunpack.c.l.s4 %v2791_v36  ;;  %v2837_v43 = vshrl.u32 %v81_v38, 7  ;;  %vm1300_vm0 = vcmask 130048  }
  0x37   :  { %1346 = vmatpush1.bf16.msra.mxu1 %v2352_v3  ;;  %v2355_v5 = vld [vmem:[#allocation5 + $0x2c4] ss:$16 sps:$4 sm:$0xff]   ;;  %1306 = vmatprep.subr.bf16.mxu0 %v2353_v4  ;;  %v2358_v7 = vld [vmem:[#allocation5 + $0x2c0] ss:$16 sps:$4 sm:$0xff]   ;;  %v2460_v36 = vld [vmem:[#allocation5 + $0xc8] ss:$16 sps:$4 sm:$0xff]  }
  0x38   :  { %1347 = vmatprep.subr.bf16.mxu1 %v2355_v5  ;;  %v2359_v8 = vld [vmem:[#allocation5 + $0xa4] ss:$16 sps:$4 sm:$0xff]   ;;  %v2363_v10 = vld [vmem:[#allocation5 + $0xa0] ss:$16 sps:$4 sm:$0xff]   ;;  %v80_v42 = vunpack.c.0.s8 %v79_v37  ;;  %v2468_v38 = vld [vmem:[#allocation5 + $0xac] ss:$16 sps:$4 sm:$0xff]  }
  0x39   :  { %v2361_v9 = vld [vmem:[#allocation5 + $0x2a4] ss:$16 sps:$4 sm:$0xff]   ;;  %v2364_v11 = vld [vmem:[#allocation5 + $0x2a0] ss:$16 sps:$4 sm:$0xff]   ;;  %s2794_s15 = smov [#allocation10]  }
  0x3a   :  { %1307 = vmatpush1.bf16.msra.mxu0 %v2357_v6  ;;  %v2365_v12 = vld [vmem:[#allocation5 + $0x84] ss:$16 sps:$4 sm:$0xff]   ;;  %v2369_v14 = vld [vmem:[#allocation5 + $0x80] ss:$16 sps:$4 sm:$0xff]   ;;  %v2840_v49 = vsub.s32 %v80_v42, %v2837_v43  ;;  %v2474_v42 = vld [vmem:[#allocation5 + $0x8c] ss:$16 sps:$4 sm:$0xff]  }
  0x3b   :  { %1348 = vmatpush1.bf16.msra.mxu1 %v2358_v7  ;;  %1308 = vmatprep.subr.bf16.mxu0 %v2359_v8  ;;  %v2367_v13 = vld [vmem:[#allocation5 + $0x284] ss:$16 sps:$4 sm:$0xff]   ;;  %v2370_v15 = vld [vmem:[#allocation5 + $0x280] ss:$16 sps:$4 sm:$0xff]   ;;  %s2048_s16 = sshll.u32 %s2794_s15, 4  ;;  %s2049_s16 = int_to_ptr.vmem [resolvable:$true] %s2048_s16 }
  0x3c   :  { %1349 = vmatprep.subr.bf16.mxu1 %v2361_v9  ;;  %v2371_v16 = vld [vmem:[#allocation5 + $0x64] ss:$16 sps:$4 sm:$0xff]   ;;  %v2375_v18 = vld [vmem:[#allocation5 + $0x60] ss:$16 sps:$4 sm:$0xff]   ;;  %s2755_s17 = scalar_lea.vmem %s2049_s16, 32  ;;  %p2760_p7 = scmp.lt.s32.totalorder %s2049_s16, %s2049_s16 }
  0x3d   :  { %v2373_v17 = vld [vmem:[#allocation5 + $0x264] ss:$16 sps:$4 sm:$0xff]   ;;  %v2376_v19 = vld [vmem:[#allocation5 + $0x260] ss:$16 sps:$4 sm:$0xff]   ;;  %p2756_p6 = scmp.ne.s32.totalorder %s2049_s16, %s2755_s17  ;;  %p2761_p8 = scmp.lt.s32.totalorder %s2755_s17, %s2755_s17 }
  0x3e   :  { %1309 = vmatpush1.bf16.msra.mxu0 %v2363_v10  ;;  %v2377_v20 = vld [vmem:[#allocation5 + $0x44] ss:$16 sps:$4 sm:$0xff]   ;;  %v2381_v22 = vld [vmem:[#allocation5 + $0x40] ss:$16 sps:$4 sm:$0xff]  }
  0x3f   :  { %1350 = vmatpush1.bf16.msra.mxu1 %v2364_v11  ;;  %1310 = vmatprep.subr.bf16.mxu0 %v2365_v12  ;;  %v2379_v21 = vld [vmem:[#allocation5 + $0x244] ss:$16 sps:$4 sm:$0xff]   ;;  %v2382_v23 = vld [vmem:[#allocation5 + $0x240] ss:$16 sps:$4 sm:$0xff]   ;;  %v74_v12 = vld [vmem:[#allocation2 + $0x8] sm:$0x3f]  ;;  %p2762_p9 = por %p2761_p8, %p2760_p7 }
  0x40   :  { %1351 = vmatprep.subr.bf16.mxu1 %v2367_v13  ;;  %v2383_v24 = vld [vmem:[#allocation5 + $0x24] ss:$16 sps:$4 sm:$0xff]   ;;  %v2387_v26 = vld [vmem:[#allocation5 + $0x20] ss:$16 sps:$4 sm:$0xff]   ;;  %v2851_v13 = vrot.slane %v74_v12, %v2840_v49 }
  0x41   :  { %v2385_v25 = vld [vmem:[#allocation5 + $0x224] ss:$16 sps:$4 sm:$0xff]   ;;  %v2388_v27 = vld [vmem:[#allocation5 + $0x220] ss:$16 sps:$4 sm:$0xff]   ;;  %p2763_p10 = pnand %p2762_p9, %p2756_p6 }
  0x42   :  { %1311 = vmatpush1.bf16.msra.mxu0 %v2369_v14  ;;  %v2389_v28 = vld [vmem:[#allocation5 + $0x4] ss:$16 sps:$4 sm:$0xff]   ;;  %v2393_v30 = vld [vmem:[#allocation5] ss:$16 sps:$4 sm:$0xff]  }
  0x43   :  { %1352 = vmatpush1.bf16.msra.mxu1 %v2370_v15  ;;  %1312 = vmatprep.subr.bf16.mxu0 %v2371_v16  ;;  %v2391_v29 = vld [vmem:[#allocation5 + $0x204] ss:$16 sps:$4 sm:$0xff]   ;;  %v2394_v31 = vld [vmem:[#allocation5 + $0x200] ss:$16 sps:$4 sm:$0xff]  }
  0x44   :  { %1353 = vmatprep.subr.bf16.mxu1 %v2373_v17  ;;  %v2395_v32 = vld [vmem:[#allocation5 + $0x1e4] ss:$16 sps:$4 sm:$0xff]   ;;  %v2399_v34 = vld [vmem:[#allocation5 + $0x1e0] ss:$16 sps:$4 sm:$0xff]  }
  0x45   :  { %v2397_v33 = vld [vmem:[#allocation5 + $0x3e4] ss:$16 sps:$4 sm:$0xff]   ;;  %v2400_v35 = vld [vmem:[#allocation5 + $0x3e0] ss:$16 sps:$4 sm:$0xff]  }
  0x46   :  { %1313 = vmatpush1.bf16.msra.mxu0 %v2375_v18  ;;  %v2401_v39 = vld [vmem:[#allocation5 + $0x1c4] ss:$16 sps:$4 sm:$0xff]   ;;  %v2405_v41 = vld [vmem:[#allocation5 + $0x1c0] ss:$16 sps:$4 sm:$0xff]   ;;  %v109_v18 = vcombine.high %v2851_v13, %v2851_v13 }
  0x47   :  { %1354 = vmatpush1.bf16.msra.mxu1 %v2376_v19  ;;  %1314 = vmatprep.subr.bf16.mxu0 %v2377_v20  ;;  %v2403_v40 = vld [vmem:[#allocation5 + $0x3c4] ss:$16 sps:$4 sm:$0xff]   ;;  %v2406_v44 = vld [vmem:[#allocation5 + $0x3c0] ss:$16 sps:$4 sm:$0xff]  }
  0x48   :  { %1355 = vmatprep.subr.bf16.mxu1 %v2379_v21  ;;  %v2407_v45 = vld [vmem:[#allocation5 + $0x1a4] ss:$16 sps:$4 sm:$0xff]   ;;  %v2411_v47 = vld [vmem:[#allocation5 + $0x1a0] ss:$16 sps:$4 sm:$0xff]   ;;  %v94_v21 = vcombine.high %v74_v12, %v74_v12  ;;  %v2522_v12 = vld [vmem:[#allocation5 + $0x18c] ss:$16 sps:$4 sm:$0xff]  }
  0x49   :  { %v2409_v46 = vld [vmem:[#allocation5 + $0x3a4] ss:$16 sps:$4 sm:$0xff]   ;;  %v2412_v48 = vld [vmem:[#allocation5 + $0x3a0] ss:$16 sps:$4 sm:$0xff]  }
  0x4a   :  { %1315 = vmatpush1.bf16.msra.mxu0 %v2381_v22  ;;  %v2413_v50 = vld [vmem:[#allocation5 + $0x184] ss:$16 sps:$4 sm:$0xff]   ;;  %v2417_v53 = vld [vmem:[#allocation5 + $0x180] ss:$16 sps:$4 sm:$0xff]  }
  0x4b   :  { %1356 = vmatpush1.bf16.msra.mxu1 %v2382_v23  ;;  %1316 = vmatprep.subr.bf16.mxu0 %v2383_v24  ;;  %v2415_v51 = vld [vmem:[#allocation5 + $0x384] ss:$16 sps:$4 sm:$0xff]   ;;  %v2418_v56 = vld [vmem:[#allocation5 + $0x380] ss:$16 sps:$4 sm:$0xff]  }
  0x4c   :  { %1357 = vmatprep.subr.bf16.mxu1 %v2385_v25  ;;  %v73_v52 = vld [vmem:[#allocation2] sm:$0xff]  ;;  %v2455_v25 = vld [vmem:[#allocation5 + $0xec] ss:$16 sps:$4 sm:$0xff]  }
  0x4d   :  { %v84_v54 = vrot.slane %v73_v52, %v2840_v49  ;;  %v77_v55 = vcombine.high %v73_v52, %v73_v52  ;;  %v2419_v57 = vld [vmem:[#allocation5 + $0x164] ss:$16 sps:$4 sm:$0xff]   ;;  %v2423_v61 = vld [vmem:[#allocation5 + $0x160] ss:$16 sps:$4 sm:$0xff]  }
  0x4e   :  { %1317 = vmatpush1.bf16.msra.mxu0 %v2387_v26  ;;  %v2421_v58 = vld [vmem:[#allocation5 + $0x364] ss:$16 sps:$4 sm:$0xff]   ;;  %v2424_v0 = vld [vmem:[#allocation5 + $0x360] ss:$16 sps:$4 sm:$0xff]   ;;  %v2859_v26 = vpack.c.bf16 %v109_v18, %v109_v18 }
  0x4f   :  { %1358 = vmatpush1.bf16.msra.mxu1 %v2388_v27  ;;  %1318 = vmatprep.subr.bf16.mxu0 %v2389_v28  ;;  %v92_v59 = vcombine.high %v84_v54, %v84_v54  ;;  %v91_v60 = vrot.slane %v77_v55, %v2840_v49  ;;  %v2425_v1 = vld [vmem:[#allocation5 + $0x144] ss:$16 sps:$4 sm:$0xff]   ;;  %v2429_v4 = vld [vmem:[#allocation5 + $0x140] ss:$16 sps:$4 sm:$0xff]   ;;  %v2855_v19 = vpack.c.bf16 %v84_v54, %v84_v54  ;;  %v2492_v55 = vld [vmem:[#allocation5 + $0x2c] ss:$16 sps:$4 sm:$0xff]  }
  0x50   :  { %1359 = vmatprep.subr.bf16.mxu1 %v2391_v29  ;;  %v2427_v2 = vld [vmem:[#allocation5 + $0x344] ss:$16 sps:$4 sm:$0xff]   ;;  %v2430_v5 = vld [vmem:[#allocation5 + $0x340] ss:$16 sps:$4 sm:$0xff]   ;;  %v108_v27 = vrot.slane %v94_v21, %v2840_v49  ;;  %v2792_v29 = vmov 0  }
  0x51   :  { %v2844_v62 = vpack.c.bf16 %v92_v59, %v92_v59  ;;  %v93_v63 = vcombine.high %v91_v60, %v91_v60  ;;  %v2431_v6 = vld [vmem:[#allocation5 + $0x124] ss:$16 sps:$4 sm:$0xff]   ;;  %v2435_v8 = vld [vmem:[#allocation5 + $0x120] ss:$16 sps:$4 sm:$0xff]   ;;  %v2857_v20 = vpack.c.bf16 %v91_v60, %v91_v60  ;;  %v2478_v49 = vld [vmem:[#allocation5 + $0x68] ss:$16 sps:$4 sm:$0xff]  }
  0x52   :  { %1319 = vmatpush1.bf16.msra.mxu0 %v2393_v30  ;;  %v2433_v7 = vld [vmem:[#allocation5 + $0x324] ss:$16 sps:$4 sm:$0xff]   ;;  %v2436_v9 = vld [vmem:[#allocation5 + $0x320] ss:$16 sps:$4 sm:$0xff]   ;;  %v2498_v59 = vld [vmem:[#allocation5 + $0xc] ss:$16 sps:$4 sm:$0xff]  }
  0x53   :  { %1360 = vmatpush1.bf16.msra.mxu1 %v2394_v31  ;;  %1320 = vmatprep.subr.bf16.mxu0 %v2395_v32  ;;  %v2846_v3 = vpack.c.bf16 %v93_v63, %v93_v63  ;;  %v2437_v10 = vld [vmem:[#allocation5 + $0x104] ss:$16 sps:$4 sm:$0xff]   ;;  %v2441_v14 = vld [vmem:[#allocation5 + $0x100] ss:$16 sps:$4 sm:$0xff]   ;;  %v2866_v31 = vpack.c.bf16 %v108_v27, %v108_v27  ;;  %v2453_v32 = vld [vmem:[#allocation5 + $0xe8] ss:$16 sps:$4 sm:$0xff]  }
  0x54   :  { %1361 = vmatprep.subr.bf16.mxu1 %v2397_v33  ;;  %1336 = vmatprep.mubr.bf16.mxu0 %v2844_v62  ;;  %v2439_v11 = vld [vmem:[#allocation5 + $0x304] ss:$16 sps:$4 sm:$0xff]   ;;  %v2442_v15 = vld [vmem:[#allocation5 + $0x300] ss:$16 sps:$4 sm:$0xff]   ;;  %v2504_v63 = vld [vmem:[#allocation5 + $0x1ec] ss:$16 sps:$4 sm:$0xff]  }
  0x55   :  { %1377 = vmatprep.mubr.bf16.mxu1 %v2846_v3  ;;  %v2446_v16 = vld [vmem:[#allocation5 + $0x4e4] ss:$16 sps:$4 sm:$0xff]   ;;  %v2444_v22 = vld [vmem:[#allocation5 + $0x4e0] ss:$16 sps:$4 sm:$0xff]   ;;  %v2526_v21 = vld [vmem:[#allocation5 + $0x168] ss:$16 sps:$4 sm:$0xff]  }
  0x56   :  { %1321 = vmatpush2.bf16.msra.mxu0 %v2399_v34  ;;  %v2449_v17 = vld [vmem:[#allocation5 + $0x604] ss:$16 sps:$4 sm:$0xff]   ;;  %v2447_v23 = vld [vmem:[#allocation5 + $0x600] ss:$16 sps:$4 sm:$0xff]   ;;  %v2462_v34 = vld [vmem:[#allocation5 + $0xcc] ss:$16 sps:$4 sm:$0xff]  }
  0x57   :  { %1362 = vmatpush2.bf16.msra.mxu1 %v2400_v35  ;;  %1322 = vmatprep.subr.bf16.mxu0 %v2401_v39  ;;  %v2452_v24 = vld [vmem:[#allocation5 + $0x4c4] ss:$16 sps:$4 sm:$0xff]   ;;  %v2450_v28 = vld [vmem:[#allocation5 + $0x4c0] ss:$16 sps:$4 sm:$0xff]  }
  0x58   :  { %1363 = vmatprep.subr.bf16.mxu1 %v2403_v40  ;;  %v2458_v30 = vld [vmem:[#allocation5 + $0x4a4] ss:$16 sps:$4 sm:$0xff]   ;;  %v2456_v33 = vld [vmem:[#allocation5 + $0x4a0] ss:$16 sps:$4 sm:$0xff]   ;;  %v2466_v40 = vld [vmem:[#allocation5 + $0xa8] ss:$16 sps:$4 sm:$0xff]  }
  0x59   :  { %v2465_v35 = vld [vmem:[#allocation5 + $0x484] ss:$16 sps:$4 sm:$0xff]   ;;  %v2463_v37 = vld [vmem:[#allocation5 + $0x480] ss:$16 sps:$4 sm:$0xff]  }
  0x5a   :  { %1323 = vmatpush2.bf16.msra.mxu0 %v2405_v41  ;;  %v2471_v39 = vld [vmem:[#allocation5 + $0x464] ss:$16 sps:$4 sm:$0xff]   ;;  %v2469_v41 = vld [vmem:[#allocation5 + $0x460] ss:$16 sps:$4 sm:$0xff]  }
  0x5b   :  { %1364 = vmatpush2.bf16.msra.mxu1 %v2406_v44  ;;  %1324 = vmatprep.subr.bf16.mxu0 %v2407_v45  ;;  %v2477_v44 = vld [vmem:[#allocation5 + $0x444] ss:$16 sps:$4 sm:$0xff]   ;;  %v2472_v45 = vld [vmem:[#allocation5 + $0x88] ss:$16 sps:$4 sm:$0xff]   ;;  %v2487_v54 = vld [vmem:[#allocation5 + $0x400] ss:$16 sps:$4 sm:$0xff]  }
  0x5c   :  { %1365 = vmatprep.subr.bf16.mxu1 %v2409_v46  ;;  %v2475_v46 = vld [vmem:[#allocation5 + $0x440] ss:$16 sps:$4 sm:$0xff]   ;;  %v2489_v52 = vld [vmem:[#allocation5 + $0x404] ss:$16 sps:$4 sm:$0xff]  }
  0x5d   :  { %v2501_v60 = vld [vmem:[#allocation5 + $0x5c4] ss:$16 sps:$4 sm:$0xff]   ;;  %v2535_v27 = vld [vmem:[#allocation5 + $0x500] ss:$16 sps:$4 sm:$0xff]  }
  0x5e   :  { %1325 = vmatpush2.bf16.msra.mxu0 %v2411_v47  ;;  %v2480_v47 = vld [vmem:[#allocation5 + $0x6c] ss:$16 sps:$4 sm:$0xff]   ;;  %v2531_v18 = vld [vmem:[#allocation5 + $0x524] ss:$16 sps:$4 sm:$0xff]  }
  0x5f   :  { %1366 = vmatpush2.bf16.msra.mxu1 %v2412_v48  ;;  %1326 = vmatprep.subr.bf16.mxu0 %v2413_v50  ;;  %v2483_v48 = vld [vmem:[#allocation5 + $0x424] ss:$16 sps:$4 sm:$0xff]   ;;  %v2481_v50 = vld [vmem:[#allocation5 + $0x420] ss:$16 sps:$4 sm:$0xff]  }
  0x60   :  { %1367 = vmatprep.subr.bf16.mxu1 %v2415_v51  ;;  %v2486_v51 = vld [vmem:[#allocation5 + $0x4c] ss:$16 sps:$4 sm:$0xff]  }
  0x62   :  { %1327 = vmatpush2.bf16.msra.mxu0 %v2417_v53  ;;  %v2484_v53 = vld [vmem:[#allocation5 + $0x48] ss:$16 sps:$4 sm:$0xff]  }
  0x63   :  { %1368 = vmatpush2.bf16.msra.mxu1 %v2418_v56  ;;  %1328 = vmatprep.subr.bf16.mxu0 %v2419_v57  ;;  %v2495_v56 = vld [vmem:[#allocation5 + $0x5e4] ss:$16 sps:$4 sm:$0xff]   ;;  %v2490_v57 = vld [vmem:[#allocation5 + $0x28] ss:$16 sps:$4 sm:$0xff]  }
  0x64   :  { %1369 = vmatprep.subr.bf16.mxu1 %v2421_v58  ;;  %v2493_v58 = vld [vmem:[#allocation5 + $0x5e0] ss:$16 sps:$4 sm:$0xff]  }
  0x66   :  { %1329 = vmatpush2.bf16.msra.mxu0 %v2423_v61  ;;  %v2496_v61 = vld [vmem:[#allocation5 + $0x8] ss:$16 sps:$4 sm:$0xff]  }
  0x67   :  { %1370 = vmatpush2.bf16.msra.mxu1 %v2424_v0  ;;  %1330 = vmatprep.subr.bf16.mxu0 %v2425_v1  ;;  %v2507_v0 = vld [vmem:[#allocation5 + $0x5a4] ss:$16 sps:$4 sm:$0xff]   ;;  %v2502_v1 = vld [vmem:[#allocation5 + $0x1e8] ss:$16 sps:$4 sm:$0xff]  }
  0x68   :  { %1371 = vmatprep.subr.bf16.mxu1 %v2427_v2  ;;  %v2505_v2 = vld [vmem:[#allocation5 + $0x5a0] ss:$16 sps:$4 sm:$0xff]  }
  0x6a   :  { %1331 = vmatpush2.bf16.msra.mxu0 %v2429_v4  ;;  %v2510_v4 = vld [vmem:[#allocation5 + $0x1cc] ss:$16 sps:$4 sm:$0xff]  }
  0x6b   :  { %1372 = vmatpush2.bf16.msra.mxu1 %v2430_v5  ;;  %1332 = vmatprep.subr.bf16.mxu0 %v2431_v6  ;;  %v2513_v5 = vld [vmem:[#allocation5 + $0x584] ss:$16 sps:$4 sm:$0xff]   ;;  %v2508_v6 = vld [vmem:[#allocation5 + $0x1c8] ss:$16 sps:$4 sm:$0xff]  }
  0x6c   :  { %1373 = vmatprep.subr.bf16.mxu1 %v2433_v7  ;;  %v2511_v7 = vld [vmem:[#allocation5 + $0x580] ss:$16 sps:$4 sm:$0xff]  }
  0x6e   :  { %1333 = vmatpush2.bf16.msra.mxu0 %v2435_v8  ;;  %v2516_v8 = vld [vmem:[#allocation5 + $0x1ac] ss:$16 sps:$4 sm:$0xff]  }
  0x6f   :  { %1374 = vmatpush2.bf16.msra.mxu1 %v2436_v9  ;;  %1334 = vmatprep.subr.bf16.mxu0 %v2437_v10  ;;  %v2519_v9 = vld [vmem:[#allocation5 + $0x564] ss:$16 sps:$4 sm:$0xff]   ;;  %v2514_v10 = vld [vmem:[#allocation5 + $0x1a8] ss:$16 sps:$4 sm:$0xff]  }
  0x70   :  { %1375 = vmatprep.subr.bf16.mxu1 %v2439_v11  ;;  %v2517_v11 = vld [vmem:[#allocation5 + $0x560] ss:$16 sps:$4 sm:$0xff]  }
  0x72   :  { %1335 = vmatpush2.bf16.msra.mxu0 %v2441_v14  ;;  %v2525_v14 = vld [vmem:[#allocation5 + $0x544] ss:$16 sps:$4 sm:$0xff]  }
  0x73   :  { %1376 = vmatpush2.bf16.msra.mxu1 %v2442_v15  ;;  %1386 = vmatprep.subr.bf16.mxu0 %v2446_v16  ;;  %v2520_v15 = vld [vmem:[#allocation5 + $0x188] ss:$16 sps:$4 sm:$0xff]   ;;  %v2523_v16 = vld [vmem:[#allocation5 + $0x540] ss:$16 sps:$4 sm:$0xff]  }
  0x74   :  { %1441 = vmatprep.subr.bf16.mxu1 %v2449_v17  ;;  %v2528_v17 = vld [vmem:[#allocation5 + $0x16c] ss:$16 sps:$4 sm:$0xff]  }
  0x75   :  { %1337 = vmatmul.mubr.bf16.vlgmr.msra.gmra.mxu0 %v2855_v19 }
  0x76   :  { %1378 = vmatmul.mubr.bf16.vlgmr.msra.gmra.mxu1 %v2857_v20  ;;  %1387 = vmatpush1.bf16.msra.mxu0 %v2444_v22  ;;  %v2529_v22 = vld [vmem:[#allocation5 + $0x520] ss:$16 sps:$4 sm:$0xff]  }
  0x77   :  { %1442 = vmatpush1.bf16.msra.mxu1 %v2447_v23  ;;  %1388 = vmatprep.subr.bf16.mxu0 %v2452_v24  ;;  %v2534_v23 = vld [vmem:[#allocation5 + $0x14c] ss:$16 sps:$4 sm:$0xff]   ;;  %v2537_v24 = vld [vmem:[#allocation5 + $0x504] ss:$16 sps:$4 sm:$0xff]  }
  0x78   :  { %1459 = vmatprep.mubr.bf16.mxu1 %v2792_v29  ;;  %1468 = vmatprep.subr.bf16.mxu1 %v2455_v25  ;;  %v2532_v25 = vld [vmem:[#allocation5 + $0x148] ss:$16 sps:$4 sm:$0xff]  }
  0x79   :  { %1418 = vmatprep.mubr.bf16.mxu0 %v2859_v26 }
  0x7a   :  { %1389 = vmatpush1.bf16.msra.mxu0 %v2450_v28  ;;  %v2540_v28 = vld [vmem:[#allocation5 + $0x12c] ss:$16 sps:$4 sm:$0xff]  }
  0x7b   :  { %1390 = vmatprep.subr.bf16.mxu0 %v2458_v30  ;;  %v2543_v30 = vld [vmem:[#allocation5 + $0x2ec] ss:$16 sps:$4 sm:$0xff]  }
  0x7e   :  { %2255 = vmatmul.mubr.msk.bf16.vlgmr.msra.gmra.mxu1 %vm1300_vm0, %v2866_v31  ;;  %1391 = vmatpush1.bf16.msra.mxu0 %v2456_v33  ;;  %v2538_v33 = vld [vmem:[#allocation5 + $0x128] ss:$16 sps:$4 sm:$0xff]  }
  0x7f   :  { %1469 = vmatpush1.bf16.msra.mxu1 %v2453_v32  ;;  %1392 = vmatprep.subr.bf16.mxu0 %v2465_v35  ;;  %v2873_v32 = vpack.c.bf16 %v2851_v13, %v2851_v13  ;;  %v2546_v35 = vld [vmem:[#allocation5 + $0x10c] ss:$16 sps:$4 sm:$0xff]   ;;  %v2550_v13 = vld [vmem:[#allocation5 + $0x4e8] ss:$16 sps:$4 sm:$0xff]  }
  0x80   :  { %1470 = vmatprep.subr.bf16.mxu1 %v2462_v34  ;;  %1500 = vmatprep.mubr.bf16.mxu1 %v2844_v62  ;;  %v2499_v62 = vld [vmem:[#allocation5 + $0x5c0] ss:$16 sps:$4 sm:$0xff]   ;;  %v2541_v34 = vld [vmem:[#allocation5 + $0x2e8] ss:$16 sps:$4 sm:$0xff]  }
  0x82   :  { %1393 = vmatpush1.bf16.msra.mxu0 %v2463_v37  ;;  %v2544_v37 = vld [vmem:[#allocation5 + $0x108] ss:$16 sps:$4 sm:$0xff]  }
  0x83   :  { %1471 = vmatpush1.bf16.msra.mxu1 %v2460_v36  ;;  %1394 = vmatprep.subr.bf16.mxu0 %v2471_v39  ;;  %v2549_v36 = vld [vmem:[#allocation5 + $0x2cc] ss:$16 sps:$4 sm:$0xff]  }
  0x84   :  { %1472 = vmatprep.subr.bf16.mxu1 %v2468_v38  ;;  %v2547_v38 = vld [vmem:[#allocation5 + $0x2c8] ss:$16 sps:$4 sm:$0xff]   ;;  %v2552_v39 = vld [vmem:[#allocation5 + $0x4ec] ss:$16 sps:$4 sm:$0xff]  }
  0x86   :  { %1395 = vmatpush1.bf16.msra.mxu0 %v2469_v41  ;;  %v2553_v41 = vld [vmem:[#allocation5 + $0x2a8] ss:$16 sps:$4 sm:$0xff]  }
  0x87   :  { %1473 = vmatpush1.bf16.msra.mxu1 %v2466_v40  ;;  %1396 = vmatprep.subr.bf16.mxu0 %v2477_v44  ;;  %v2555_v40 = vld [vmem:[#allocation5 + $0x2ac] ss:$16 sps:$4 sm:$0xff]  }
  0x88   :  { %1474 = vmatprep.subr.bf16.mxu1 %v2474_v42  ;;  %v2558_v42 = vld [vmem:[#allocation5 + $0x4cc] ss:$16 sps:$4 sm:$0xff]  }
  0x89   :  { %v2561_v44 = vld [vmem:[#allocation5 + $0x28c] ss:$16 sps:$4 sm:$0xff]  }
  0x8a   :  { %1397 = vmatpush1.bf16.msra.mxu0 %v2475_v46  ;;  %v2559_v46 = vld [vmem:[#allocation5 + $0x288] ss:$16 sps:$4 sm:$0xff]  }
  0x8b   :  { %1475 = vmatpush1.bf16.msra.mxu1 %v2472_v45  ;;  %1398 = vmatprep.subr.bf16.mxu0 %v2483_v48  ;;  %v2556_v45 = vld [vmem:[#allocation5 + $0x4c8] ss:$16 sps:$4 sm:$0xff]   ;;  %v2567_v48 = vld [vmem:[#allocation5 + $0x26c] ss:$16 sps:$4 sm:$0xff]  }
  0x8c   :  { %1476 = vmatprep.subr.bf16.mxu1 %v2480_v47  ;;  %v2564_v47 = vld [vmem:[#allocation5 + $0x4ac] ss:$16 sps:$4 sm:$0xff]  }
  0x8e   :  { %1399 = vmatpush1.bf16.msra.mxu0 %v2481_v50  ;;  %v2565_v50 = vld [vmem:[#allocation5 + $0x268] ss:$16 sps:$4 sm:$0xff]  }
  0x8f   :  { %1477 = vmatpush1.bf16.msra.mxu1 %v2478_v49  ;;  %1400 = vmatprep.subr.bf16.mxu0 %v2489_v52  ;;  %v2562_v49 = vld [vmem:[#allocation5 + $0x4a8] ss:$16 sps:$4 sm:$0xff]  }
  0x90   :  { %1478 = vmatprep.subr.bf16.mxu1 %v2486_v51  ;;  %v2573_v51 = vld [vmem:[#allocation5 + $0x24c] ss:$16 sps:$4 sm:$0xff]   ;;  %v2568_v52 = vld [vmem:[#allocation5 + $0x488] ss:$16 sps:$4 sm:$0xff]  }
  0x92   :  { %1401 = vmatpush1.bf16.msra.mxu0 %v2487_v54  ;;  %v2576_v54 = vld [vmem:[#allocation5 + $0x46c] ss:$16 sps:$4 sm:$0xff]  }
  0x93   :  { %1479 = vmatpush1.bf16.msra.mxu1 %v2484_v53  ;;  %1402 = vmatprep.subr.bf16.mxu0 %v2495_v56  ;;  %v2571_v53 = vld [vmem:[#allocation5 + $0x248] ss:$16 sps:$4 sm:$0xff]  }
  0x94   :  { %1480 = vmatprep.subr.bf16.mxu1 %v2492_v55  ;;  %v2574_v55 = vld [vmem:[#allocation5 + $0x468] ss:$16 sps:$4 sm:$0xff]  }
  0x95   :  { %v2577_v56 = vld [vmem:[#allocation5 + $0x228] ss:$16 sps:$4 sm:$0xff]  }
  0x96   :  { %1403 = vmatpush2.bf16.msra.mxu0 %v2493_v58  ;;  %v2585_v58 = vld [vmem:[#allocation5 + $0x20c] ss:$16 sps:$4 sm:$0xff]  }
  0x97   :  { %1481 = vmatpush1.bf16.msra.mxu1 %v2490_v57  ;;  %1404 = vmatprep.subr.bf16.mxu0 %v2501_v60  ;;  %v2582_v57 = vld [vmem:[#allocation5 + $0x44c] ss:$16 sps:$4 sm:$0xff]  }
  0x98   :  { %1482 = vmatprep.subr.bf16.mxu1 %v2498_v59  ;;  %v2583_v59 = vld [vmem:[#allocation5 + $0x208] ss:$16 sps:$4 sm:$0xff]   ;;  %v2588_v60 = vld [vmem:[#allocation5 + $0x42c] ss:$16 sps:$4 sm:$0xff]  }
  0x9a   :  { %1405 = vmatpush2.bf16.msra.mxu0 %v2499_v62  ;;  %v2586_v62 = vld [vmem:[#allocation5 + $0x428] ss:$16 sps:$4 sm:$0xff]  }
  0x9b   :  { %1483 = vmatpush1.bf16.msra.mxu1 %v2496_v61  ;;  %1406 = vmatprep.subr.bf16.mxu0 %v2507_v0  ;;  %v2591_v61 = vld [vmem:[#allocation5 + $0x3ec] ss:$16 sps:$4 sm:$0xff]  }
  0x9c   :  { %1484 = vmatprep.subr.bf16.mxu1 %v2504_v63  ;;  %v2589_v63 = vld [vmem:[#allocation5 + $0x3e8] ss:$16 sps:$4 sm:$0xff]   ;;  %v2594_v0 = vld [vmem:[#allocation5 + $0x40c] ss:$16 sps:$4 sm:$0xff]  }
  0x9e   :  { %1407 = vmatpush2.bf16.msra.mxu0 %v2505_v2  ;;  %v2592_v2 = vld [vmem:[#allocation5 + $0x408] ss:$16 sps:$4 sm:$0xff]  }
  0x9f   :  { %1485 = vmatpush2.bf16.msra.mxu1 %v2502_v1  ;;  %1408 = vmatprep.subr.bf16.mxu0 %v2513_v5  ;;  %v2597_v1 = vld [vmem:[#allocation5 + $0x3cc] ss:$16 sps:$4 sm:$0xff]  }
  0xa0   :  { %1486 = vmatprep.subr.bf16.mxu1 %v2510_v4  ;;  %v2595_v4 = vld [vmem:[#allocation5 + $0x3c8] ss:$16 sps:$4 sm:$0xff]   ;;  %v2600_v5 = vld [vmem:[#allocation5 + $0x5ec] ss:$16 sps:$4 sm:$0xff]  }
  0xa2   :  { %1409 = vmatpush2.bf16.msra.mxu0 %v2511_v7  ;;  %v2598_v7 = vld [vmem:[#allocation5 + $0x5e8] ss:$16 sps:$4 sm:$0xff]  }
  0xa3   :  { %1487 = vmatpush2.bf16.msra.mxu1 %v2508_v6  ;;  %1410 = vmatprep.subr.bf16.mxu0 %v2519_v9  ;;  %v2603_v6 = vld [vmem:[#allocation5 + $0x3ac] ss:$16 sps:$4 sm:$0xff]  }
  0xa4   :  { %1488 = vmatprep.subr.bf16.mxu1 %v2516_v8  ;;  %v2601_v8 = vld [vmem:[#allocation5 + $0x3a8] ss:$16 sps:$4 sm:$0xff]   ;;  %v2606_v9 = vld [vmem:[#allocation5 + $0x5cc] ss:$16 sps:$4 sm:$0xff]  }
  0xa6   :  { %1411 = vmatpush2.bf16.msra.mxu0 %v2517_v11  ;;  %v2604_v11 = vld [vmem:[#allocation5 + $0x5c8] ss:$16 sps:$4 sm:$0xff]  }
  0xa7   :  { %1489 = vmatpush2.bf16.msra.mxu1 %v2514_v10  ;;  %1412 = vmatprep.subr.bf16.mxu0 %v2525_v14  ;;  %v2609_v10 = vld [vmem:[#allocation5 + $0x38c] ss:$16 sps:$4 sm:$0xff]  }
  0xa8   :  { %1490 = vmatprep.subr.bf16.mxu1 %v2522_v12  ;;  %v2607_v12 = vld [vmem:[#allocation5 + $0x388] ss:$16 sps:$4 sm:$0xff]   ;;  %v2612_v14 = vld [vmem:[#allocation5 + $0x5ac] ss:$16 sps:$4 sm:$0xff]  }
  0xaa   :  { %1413 = vmatpush2.bf16.msra.mxu0 %v2523_v16  ;;  %v2610_v16 = vld [vmem:[#allocation5 + $0x5a8] ss:$16 sps:$4 sm:$0xff]  }
  0xab   :  { %1491 = vmatpush2.bf16.msra.mxu1 %v2520_v15  ;;  %1414 = vmatprep.subr.bf16.mxu0 %v2531_v18  ;;  %v2615_v15 = vld [vmem:[#allocation5 + $0x36c] ss:$16 sps:$4 sm:$0xff]  }
  0xac   :  { %1492 = vmatprep.subr.bf16.mxu1 %v2528_v17  ;;  %v2613_v17 = vld [vmem:[#allocation5 + $0x368] ss:$16 sps:$4 sm:$0xff]   ;;  %v2618_v18 = vld [vmem:[#allocation5 + $0x58c] ss:$16 sps:$4 sm:$0xff]  }
  0xae   :  { %1415 = vmatpush2.bf16.msra.mxu0 %v2529_v22  ;;  %v2616_v22 = vld [vmem:[#allocation5 + $0x588] ss:$16 sps:$4 sm:$0xff]  }
  0xaf   :  { %1493 = vmatpush2.bf16.msra.mxu1 %v2526_v21  ;;  %1416 = vmatprep.subr.bf16.mxu0 %v2537_v24  ;;  %v2621_v21 = vld [vmem:[#allocation5 + $0x34c] ss:$16 sps:$4 sm:$0xff]  }
  0xb0   :  { %1494 = vmatprep.subr.bf16.mxu1 %v2534_v23  ;;  %v2619_v23 = vld [vmem:[#allocation5 + $0x348] ss:$16 sps:$4 sm:$0xff]   ;;  %v2624_v24 = vld [vmem:[#allocation5 + $0x56c] ss:$16 sps:$4 sm:$0xff]  }
  0xb2   :  { %1417 = vmatpush2.bf16.msra.mxu0 %v2535_v27  ;;  %v2622_v27 = vld [vmem:[#allocation5 + $0x568] ss:$16 sps:$4 sm:$0xff]  }
  0xb3   :  { %1495 = vmatpush2.bf16.msra.mxu1 %v2532_v25  ;;  %1509 = vmatprep.subr.bf16.mxu0 %v2543_v30  ;;  %v2627_v25 = vld [vmem:[#allocation5 + $0x32c] ss:$16 sps:$4 sm:$0xff]  }
  0xb4   :  { %1496 = vmatprep.subr.bf16.mxu1 %v2540_v28  ;;  %v2625_v28 = vld [vmem:[#allocation5 + $0x328] ss:$16 sps:$4 sm:$0xff]   ;;  %v2630_v30 = vld [vmem:[#allocation5 + $0x54c] ss:$16 sps:$4 sm:$0xff]  }
  0xb5   :  { %1419 = vmatmul.mubr.bf16.vlgmr.msra.gmra.mxu0 %v2873_v32 }
  0xb6   :  { %1510 = vmatpush1.bf16.msra.mxu0 %v2541_v34  ;;  %1541 = vmatprep.mubr.bf16.mxu0 %v2846_v3  ;;  %v2570_v3 = vld [vmem:[#allocation5 + $0x48c] ss:$16 sps:$4 sm:$0xff]   ;;  %v2628_v34 = vld [vmem:[#allocation5 + $0x548] ss:$16 sps:$4 sm:$0xff]  }
  0xb7   :  { %1497 = vmatpush2.bf16.msra.mxu1 %v2538_v33  ;;  %1511 = vmatprep.subr.bf16.mxu0 %v2549_v36  ;;  %v2633_v33 = vld [vmem:[#allocation5 + $0x30c] ss:$16 sps:$4 sm:$0xff]  }
  0xb8   :  { %1498 = vmatprep.subr.bf16.mxu1 %v2546_v35  ;;  %v2631_v35 = vld [vmem:[#allocation5 + $0x308] ss:$16 sps:$4 sm:$0xff]   ;;  %v2636_v36 = vld [vmem:[#allocation5 + $0x52c] ss:$16 sps:$4 sm:$0xff]  }
  0xba   :  { %1512 = vmatpush1.bf16.msra.mxu0 %v2547_v38  ;;  %v2634_v38 = vld [vmem:[#allocation5 + $0x528] ss:$16 sps:$4 sm:$0xff]  }
  0xbb   :  { %1499 = vmatpush2.bf16.msra.mxu1 %v2544_v37  ;;  %1513 = vmatprep.subr.bf16.mxu0 %v2555_v40  ;;  %v2639_v37 = vld [vmem:[#allocation5 + $0x60c] ss:$16 sps:$4 sm:$0xff]  }
  0xbc   :  { %1550 = vmatprep.subr.bf16.mxu1 %v2552_v39  ;;  %v2637_v39 = vld [vmem:[#allocation5 + $0x608] ss:$16 sps:$4 sm:$0xff]   ;;  %v2642_v40 = vld [vmem:[#allocation5 + $0x50c] ss:$16 sps:$4 sm:$0xff]  }
  0xbe   :  { %1501 = vmatmul.mubr.bf16.vlgmr.msra.gmra.mxu1 %v2855_v19  ;;  %1514 = vmatpush1.bf16.msra.mxu0 %v2553_v41  ;;  %v2579_v19 = vld [vmem:[#allocation5 + $0x22c] ss:$16 sps:$4 sm:$0xff]   ;;  %v2640_v41 = vld [vmem:[#allocation5 + $0x508] ss:$16 sps:$4 sm:$0xff]  }
  0xbf   :  { %1551 = vmatpush1.bf16.msra.mxu1 %v2550_v13  ;;  %1515 = vmatprep.subr.bf16.mxu0 %v2561_v44  ;;  %v2643_v13 = vld [vmem:[#allocation8 + $0x78] sm:$0xff]   ;;  %v2645_v44 = vld [vmem:[#allocation8 + $0x70] sm:$0xff]  }
  0xc0   :  { %1552 = vmatprep.subr.bf16.mxu1 %v2558_v42  ;;  %1582 = vmatprep.mubr.bf16.mxu1 %v2859_v26  ;;  %v2580_v26 = vld [vmem:[#allocation5 + $0x448] ss:$16 sps:$4 sm:$0xff]   ;;  %v2644_v42 = vld [vmem:[#allocation8 + $0x38] sm:$0xff]  }
  0xc2   :  { %1516 = vmatpush1.bf16.msra.mxu0 %v2559_v46  ;;  %v2647_v46 = vld [vmem:[#allocation8 + $0x68] sm:$0xff]  }
  0xc3   :  { %1553 = vmatpush1.bf16.msra.mxu1 %v2556_v45  ;;  %1517 = vmatprep.subr.bf16.mxu0 %v2567_v48  ;;  %v2646_v45 = vld [vmem:[#allocation8 + $0x30] sm:$0xff]   ;;  %v2659_v48 = vld [vmem:[#allocation8 + $0xf8] sm:$0xff]  }
  0xc4   :  { %1554 = vmatprep.subr.bf16.mxu1 %v2564_v47  ;;  %v2649_v47 = vld [vmem:[#allocation8 + $0x60] sm:$0xff]  }
  0xc6   :  { %1518 = vmatpush1.bf16.msra.mxu0 %v2565_v50  ;;  %v2661_v50 = vld [vmem:[#allocation8 + $0xf0] sm:$0xff]  }
  0xc7   :  { %1555 = vmatpush1.bf16.msra.mxu1 %v2562_v49  ;;  %1519 = vmatprep.subr.bf16.mxu0 %v2573_v51  ;;  %v2660_v49 = vld [vmem:[#allocation8 + $0xb8] sm:$0xff]   ;;  %v2662_v51 = vld [vmem:[#allocation8 + $0xb0] sm:$0xff]  }
  0xc8   :  { %1556 = vmatprep.subr.bf16.mxu1 %v2570_v3  ;;  %v2650_v3 = vld [vmem:[#allocation8 + $0x20] sm:$0xff]  }
  0xca   :  { %1520 = vmatpush1.bf16.msra.mxu0 %v2571_v53  ;;  %v2664_v53 = vld [vmem:[#allocation8 + $0xa8] sm:$0xff]  }
  0xcb   :  { %1557 = vmatpush1.bf16.msra.mxu1 %v2568_v52  ;;  %1521 = vmatprep.subr.bf16.mxu0 %v2579_v19  ;;  %v2652_v52 = vld [vmem:[#allocation8 + $0x18] sm:$0xff]   ;;  %v2654_v19 = vld [vmem:[#allocation8 + $0x10] sm:$0xff]  }
  0xcc   :  { %1558 = vmatprep.subr.bf16.mxu1 %v2576_v54  ;;  %v2653_v54 = vld [vmem:[#allocation8 + $0x50] sm:$0xff]  }
  0xce   :  { %1522 = vmatpush1.bf16.msra.mxu0 %v2577_v56  ;;  %v2656_v56 = vld [vmem:[#allocation8 + $0x8] sm:$0xff]  }
  0xcf   :  { %1559 = vmatpush1.bf16.msra.mxu1 %v2574_v55  ;;  %1523 = vmatprep.subr.bf16.mxu0 %v2585_v58  ;;  %v2655_v55 = vld [vmem:[#allocation8 + $0x48] sm:$0xff]   ;;  %v2658_v58 = vld [vmem:[#allocation8] sm:$0xff]  }
  0xd0   :  { %1560 = vmatprep.subr.bf16.mxu1 %v2582_v57  ;;  %v2657_v57 = vld [vmem:[#allocation8 + $0x40] sm:$0xff]  }
  0xd2   :  { %1524 = vmatpush1.bf16.msra.mxu0 %v2583_v59 }
  0xd3   :  { %1561 = vmatpush1.bf16.msra.mxu1 %v2580_v26  ;;  %1525 = vmatprep.subr.bf16.mxu0 %v2591_v61 }
  0xd4   :  { %1562 = vmatprep.subr.bf16.mxu1 %v2588_v60  ;;  %v2665_v60 = vld [vmem:[#allocation8 + $0xe0] sm:$0xff]  }
  0xd6   :  { %1526 = vmatpush2.bf16.msra.mxu0 %v2589_v63 }
  0xd7   :  { %1563 = vmatpush1.bf16.msra.mxu1 %v2586_v62  ;;  %1527 = vmatprep.subr.bf16.mxu0 %v2597_v1  ;;  %v2666_v62 = vld [vmem:[#allocation8 + $0xa0] sm:$0xff]  }
  0xd8   :  { %1564 = vmatprep.subr.bf16.mxu1 %v2594_v0 }
  0xda   :  { %1528 = vmatpush2.bf16.msra.mxu0 %v2595_v4  ;;  %v2667_v4 = vld [vmem:[#allocation8 + $0xd8] sm:$0xff]  }
  0xdb   :  { %1565 = vmatpush1.bf16.msra.mxu1 %v2592_v2  ;;  %1529 = vmatprep.subr.bf16.mxu0 %v2603_v6 }
  0xdc   :  { %1566 = vmatprep.subr.bf16.mxu1 %v2600_v5  ;;  %v2668_v5 = vld [vmem:[#allocation8 + $0x98] sm:$0xff]  }
  0xde   :  { %1530 = vmatpush2.bf16.msra.mxu0 %v2601_v8 }
  0xdf   :  { %1567 = vmatpush2.bf16.msra.mxu1 %v2598_v7  ;;  %1531 = vmatprep.subr.bf16.mxu0 %v2609_v10  ;;  %v2670_v10 = vld [vmem:[#allocation8 + $0x90] sm:$0xff]  }
  0xe0   :  { %1568 = vmatprep.subr.bf16.mxu1 %v2606_v9  ;;  %v2669_v9 = vld [vmem:[#allocation8 + $0xd0] sm:$0xff]  }
  0xe2   :  { %1532 = vmatpush2.bf16.msra.mxu0 %v2607_v12 }
  0xe3   :  { %1569 = vmatpush2.bf16.msra.mxu1 %v2604_v11  ;;  %1533 = vmatprep.subr.bf16.mxu0 %v2615_v15  ;;  %v2672_v15 = vld [vmem:[#allocation8 + $0x88] sm:$0xff]  }
  0xe4   :  { %1570 = vmatprep.subr.bf16.mxu1 %v2612_v14  ;;  %v2671_v14 = vld [vmem:[#allocation8 + $0xc8] sm:$0xff]  }
  0xe6   :  { %1534 = vmatpush2.bf16.msra.mxu0 %v2613_v17  ;;  %v2673_v17 = vld [vmem:[#allocation8 + $0xc0] sm:$0xff]  }
  0xe7   :  { %1571 = vmatpush2.bf16.msra.mxu1 %v2610_v16  ;;  %1535 = vmatprep.subr.bf16.mxu0 %v2621_v21  ;;  %v2793_v21 = vmov 1966171168  }
  0xe8   :  { %1572 = vmatprep.subr.bf16.mxu1 %v2618_v18  ;;  %v2674_v18 = vld [vmem:[#allocation8 + $0x80] sm:$0xff]  }
  0xea   :  { %1536 = vmatpush2.bf16.msra.mxu0 %v2619_v23 }
  0xeb   :  { %1573 = vmatpush2.bf16.msra.mxu1 %v2616_v22  ;;  %1537 = vmatprep.subr.bf16.mxu0 %v2627_v25  ;;  %v1647_v22 = vunpack.c.l.s4 %v2793_v21 }
  0xec   :  { %1574 = vmatprep.subr.bf16.mxu1 %v2624_v24  ;;  %v2257_v24 = vld.sshfl [vmem:[#allocation7] sm:$0x33 pattern:$0x75316420] }
  0xed   :  { %v1648_v23 = vunpack.c.0.s8 %v1647_v22 }
  0xee   :  { %1538 = vmatpush2.bf16.msra.mxu0 %v2625_v28 }
  0xef   :  { %1575 = vmatpush2.bf16.msra.mxu1 %v2622_v27  ;;  %1539 = vmatprep.subr.bf16.mxu0 %v2633_v33  ;;  %v1651_v25 = vsub.s32 %v1648_v23, %v2837_v43  ;;  %v1645_v27 = vcombine.high %v2257_v24, %v2257_v24 }
  0xf0   :  { %1576 = vmatprep.subr.bf16.mxu1 %v2630_v30 }
  0xf1   :  { %v1652_v28 = vrot.slane %v2257_v24, %v1651_v25  ;;  %v1659_v30 = vrot.slane %v1645_v27, %v1651_v25  ;;  %v2258_v25 = vld [vmem:[%s2900_s4] ss:$0 sm:$0xff] }
  0xf2   :  { %1540 = vmatpush2.bf16.msra.mxu0 %v2631_v35  ;;  %v1667_v35 = vsub.s32 0, %v2837_v43 }
  0xf3   :  { %1577 = vmatpush2.bf16.msra.mxu1 %v2628_v34  ;;  %1605 = vmatprep.subr.bf16.mxu0 %v2639_v37  ;;  %v1663_v34 = vpack.i.b16 %v1652_v28, %v1652_v28 }
  0xf4   :  { %1578 = vmatprep.subr.bf16.mxu1 %v2636_v36 }
  0xf5   :  { %1542 = vmatmul.mubr.bf16.vlgmr.msra.gmra.mxu0 %v2857_v20  ;;  %v2648_v20 = vld [vmem:[#allocation8 + $0x28] sm:$0xff]  }
  0xf6   :  { %1606 = vmatpush1.bf16.msra.mxu0 %v2637_v39  ;;  %1623 = vmatprep.mubr.bf16.mxu0 %v2792_v29 }
  0xf7   :  { %1579 = vmatpush2.bf16.msra.mxu1 %v2634_v38  ;;  %2291 = vmatprep.subr.bf16.mxu0 %v2643_v13  ;;  %v1670_v38 = vpack.i.b16 %v1659_v30, %v1659_v30 }
  0xf8   :  { %1580 = vmatprep.subr.bf16.mxu1 %v2642_v40 }
  0xfb   :  { %1581 = vmatpush2.bf16.msra.mxu1 %v2640_v41  ;;  %v1668_v41 = vrot.slane %v1663_v34, %v1667_v35 }
  0xfc   :  { %2313 = vmatprep.subr.bf16.mxu1 %v2659_v48 }
  0xfd   :  { %2256 = vmatmul.mubr.msk.bf16.vlgmr.msra.gmra.mxu0 %vm1300_vm0, %v2866_v31  ;;  %v2663_v31 = vld [vmem:[#allocation8 + $0xe8] sm:$0xff]  }
  0xfe   :  { %1583 = vmatmul.mubr.bf16.vlgmr.msra.gmra.mxu1 %v2873_v32  ;;  %2292 = vmatpush3.bf16.msra.mxu0 %v2644_v42  ;;  %v2651_v32 = vld [vmem:[#allocation8 + $0x58] sm:$0xff]  }
  0xff   :  { %2293 = vmatprep.subr.bf16.mxu0 %v2645_v44  ;;  %2314 = vmatpush3.bf16.msra.mxu1 %v2660_v49 }
 0x100   :  { %2315 = vmatprep.subr.bf16.mxu1 %v2661_v50 }
 0x102   :  { %2294 = vmatpush3.bf16.msra.mxu0 %v2646_v45 }
 0x103   :  { %2295 = vmatprep.subr.bf16.mxu0 %v2647_v46  ;;  %2316 = vmatpush3.bf16.msra.mxu1 %v2662_v51  ;;  %v1675_v46 = vrot.slane %v1670_v38, %v1667_v35 }
 0x104   :  { %2317 = vmatprep.subr.bf16.mxu1 %v2663_v31 }
 0x106   :  { %2296 = vmatpush3.bf16.msra.mxu0 %v2648_v20 }
 0x107   :  { %2297 = vmatprep.subr.bf16.mxu0 %v2649_v47  ;;  %2318 = vmatpush3.bf16.msra.mxu1 %v2664_v53 }
 0x108   :  { %2319 = vmatprep.subr.bf16.mxu1 %v2665_v60 }
 0x10a   :  { %2298 = vmatpush3.bf16.msra.mxu0 %v2650_v3 }
 0x10b   :  { %2299 = vmatprep.subr.bf16.mxu0 %v2651_v32  ;;  %2320 = vmatpush3.bf16.msra.mxu1 %v2666_v62 }
 0x10c   :  { %2321 = vmatprep.subr.bf16.mxu1 %v2667_v4 }
 0x10e   :  { %2300 = vmatpush3.bf16.msra.mxu0 %v2652_v52 }
 0x10f   :  { %2301 = vmatprep.subr.bf16.mxu0 %v2653_v54  ;;  %2322 = vmatpush3.bf16.msra.mxu1 %v2668_v5 }
 0x110   :  { %2323 = vmatprep.subr.bf16.mxu1 %v2669_v9 }
 0x112   :  { %2302 = vmatpush3.bf16.msra.mxu0 %v2654_v19  ;;  %v1660_v19 = vcombine.high %v1652_v28, %v1652_v28 }
 0x113   :  { %2303 = vmatprep.subr.bf16.mxu0 %v2655_v55  ;;  %2324 = vmatpush3.bf16.msra.mxu1 %v2670_v10  ;;  %v1661_v55 = vcombine.high %v1659_v30, %v1659_v30 }
 0x114   :  { %2325 = vmatprep.subr.bf16.mxu1 %v2671_v14 }
 0x115   :  { %v1684_v62 = vpack.i.b16 %v1661_v55, %v1661_v55 }
 0x116   :  { %2304 = vmatpush3.bf16.msra.mxu0 %v2656_v56 }
 0x117   :  { %2305 = vmatprep.subr.bf16.mxu0 %v2657_v57  ;;  %2326 = vmatpush3.bf16.msra.mxu1 %v2672_v15  ;;  %v1689_v9 = vrot.slane %v1684_v62, %v1667_v35 }
 0x118   :  { %2327 = vmatprep.subr.bf16.mxu1 %v2673_v17 }
 0x11a   :  { %2306 = vmatpush3.bf16.msra.mxu0 %v2658_v58 }
 0x11b   :  { %2328 = vmatpush3.bf16.msra.mxu1 %v2674_v18 }
 0x135   :  { %v1338_v26 = vpop.f32.mrf.mxu0 }
 0x136   :  { %v1379_v59 = vpop.f32.mrf.mxu1 }
 0x137   :  { %v1380_v61 = vadd.f32 %v1379_v59, %v1338_v26  ;;  %v1340_v63 = vpop.f32.mrf.mxu0  ;;  %v1677_v59 = vpack.i.b16 %v1660_v19, %v1660_v19 }
 0x138   :  { %v1381_v0 = vpop.f32.mrf.mxu1 }
 0x139   :  { %v1342_v1 = vpop.f32.mrf.mxu0  ;;  %v1382_v36 = vadd.f32 %v1381_v0, %v1340_v63  ;;  %v1682_v4 = vrot.slane %v1677_v59, %v1667_v35 }
 0x13a   :  { %v1383_v2 = vpop.f32.mrf.mxu1 }
 0x13b   :  { %v1343_v6 = vpop.f32.mrf.mxu0 }
 0x13c   :  { %v1384_v7 = vpop.f32.mrf.mxu1 }
 0x13e   :  { %v1461_v8 = vpop.f32.mrf.mxu1 }
 0x140   :  { %v1463_v11 = vpop.f32.mrf.mxu1 }
 0x142   :  { %v1465_v12 = vpop.f32.mrf.mxu1 }
 0x144   :  { %v1466_v16 = vpop.f32.mrf.mxu1 }
 0x175   :  { %v1420_v33 = vpop.f32.mrf.mxu0 }
 0x176   :  { %v1421_v37 = vadd.f32 %v1420_v33, %v1380_v61 }
 0x177   :  { %v1422_v39 = vpop.f32.mrf.mxu0 }
 0x178   :  { %v1462_v40 = vadd.f32 %v1461_v8, %v1421_v37  ;;  %v1423_v13 = vadd.f32 %v1422_v39, %v1382_v36 }
 0x179   :  { %v1424_v42 = vpop.f32.mrf.mxu0 }
 0x17a   :  { %v1632_v44 = vpack.c.bf16 %v1462_v40, %v1462_v40  ;;  %v1464_v45 = vadd.f32 %v1463_v11, %v1423_v13 }
 0x17b   :  { %v1425_v20 = vpop.f32.mrf.mxu0 }
 0x17c   :  { %v1633_v47 = vpack.c.bf16 %v1464_v45, %v1464_v45  ;;  %v1690_v48 = vadd.bf16 %v1668_v41, %v1632_v44 }
 0x17e   :  { %v1502_v49 = vpop.f32.mrf.mxu1  ;;  %v1691_v50 = vadd.bf16 %v1675_v46, %v1633_v47  ;;  %v1694_v43 = vmax.bf16 %v2792_v29, %v1690_v48 }
 0x180   :  { %v1504_v3 = vpop.f32.mrf.mxu1  ;;  %v1695_v51 = vmax.bf16 %v2792_v29, %v1691_v50 }
 0x182   :  { %v1506_v32 = vpop.f32.mrf.mxu1  ;;  %1993 = vmatprep.mubr.bf16.mxu0 %v1695_v51 }
 0x183   :  { %1994 = vmatmul.mubr.bf16.vlgmr.msra.gmra.mxu0 %v1694_v43 }
 0x184   :  { %v1507_v31 = vpop.f32.mrf.mxu1 }
 0x1b5   :  { %v1543_v52 = vpop.f32.mrf.mxu0 }
 0x1b6   :  { %v1544_v57 = vadd.f32 %v1543_v52, %v1502_v49 }
 0x1b7   :  { %v1545_v53 = vpop.f32.mrf.mxu0 }
 0x1b8   :  { %v1546_v60 = vadd.f32 %v1545_v53, %v1504_v3 }
 0x1b9   :  { %v1547_v54 = vpop.f32.mrf.mxu0 }
 0x1bb   :  { %v1548_v56 = vpop.f32.mrf.mxu0 }
 0x1bd   :  { %v1625_v26 = vpop.f32.mrf.mxu0 }
 0x1be   :  { %v1584_v58 = vpop.f32.mrf.mxu1 }
 0x1bf   :  { %v1585_v61 = vadd.f32 %v1584_v58, %v1544_v57  ;;  %v1627_v0 = vpop.f32.mrf.mxu0 }
 0x1c0   :  { %v1586_v63 = vpop.f32.mrf.mxu1 }
 0x1c1   :  { %v1626_v1 = vadd.f32 %v1625_v26, %v1585_v61  ;;  %v1587_v2 = vadd.f32 %v1586_v63, %v1546_v60  ;;  %v1629_v6 = vpop.f32.mrf.mxu0 }
 0x1c2   :  { %v1588_v5 = vpop.f32.mrf.mxu1 }
 0x1c3   :  { %v1634_v7 = vpack.c.bf16 %v1626_v1, %v1626_v1  ;;  %v1628_v8 = vadd.f32 %v1627_v0, %v1587_v2  ;;  %v1630_v11 = vpop.f32.mrf.mxu0 }
 0x1c4   :  { %v1589_v10 = vpop.f32.mrf.mxu1 }
 0x1c5   :  { %v1635_v12 = vpack.c.bf16 %v1628_v8, %v1628_v8  ;;  %v1692_v14 = vadd.bf16 %v1682_v4, %v1634_v7 }
 0x1c7   :  { %v1693_v15 = vadd.bf16 %v1689_v9, %v1635_v12  ;;  %v1696_v17 = vmax.bf16 %v2792_v29, %v1692_v14 }
 0x1c9   :  { %v1697_v16 = vmax.bf16 %v2792_v29, %v1693_v15 }
 0x1cb   :  { %2033 = vmatprep.mubr.bf16.mxu1 %v1697_v16 }
 0x1cc   :  { %2034 = vmatmul.mubr.bf16.vlgmr.msra.gmra.mxu1 %v1696_v17 }
 0x243   :  { %v2307_v18 = vpop.f32.mrf.mxu0 }
 0x245   :  { %v2308_v21 = vpop.f32.mrf.mxu0 }
 0x246   :  { %v2309_v22 = vadd.f32 %v2308_v21, %v2307_v18 }
 0x247   :  { %v2310_v23 = vpop.f32.mrf.mxu0 }
 0x248   :  { %v1996_v30 = vadd.f32 %v2309_v22, %v2258_v25 }
 0x249   :  { %v2311_v24 = vpop.f32.mrf.mxu0 }
 0x28c   :  { %v2329_v27 = vpop.f32.mrf.mxu1 }
 0x28e   :  { %v2330_v28 = vpop.f32.mrf.mxu1 }
 0x28f   :  { %v2331_v33 = vadd.f32 %v2330_v28, %v2329_v27 }
 0x290   :  { %v2332_v34 = vpop.f32.mrf.mxu1 }
 0x291   :  { %v2036_v35 = vadd.f32 %v2331_v33, %v1996_v30 }
 0x292   :  { %v2333_v29 = vpop.f32.mrf.mxu1 }
 0x293   :  { %2041 = vst [vmem:[#allocation10] sm:$0x3] %v2036_v35 }
 0x294   :  { %2766 = shalt.err (!%p2763_p10)
}
 0x295   :  { %2051 = dma.vmem_to_hbm [thread:$0]  %s2049_s16, 32, %s2901_s5, [#allocation4]  }
 0x296   :  { %2781 = dma.done.wait [#allocation4], 32  }
 0x297   :  { %2782 = vsyncadd [#allocation4], 4294967264 }
 0x298   :  { %2055 = vsyncpa [#allocation3], 1 }
 0x299   :  { %2056 = vsyncpa [#allocation6], 1 }
 0x29a   :  { %2057 = vsyncpa [#allocation9], 1 }
 0x29b   :  { %2058 = vsyncpa [#allocation4], 1 }

</bundles_post_ra>
